<compile_context>
chip_gen: v7x
topology: tpu7x:2x2x1
jax: 0.10.0
libtpu: 0.0.40
codegen_flags: <defaults>
</compile_context>

<pallas_src>
import functools

import jax
import jax.numpy as jnp
from jax import lax
from jax.experimental import pallas as pl
from jax.experimental.pallas import tpu as pltpu

HIDDEN = 256
LOG_STD_MIN = -20.0
LOG_STD_MAX = 2.0

# Tile-selection knobs.
TM_MAX = 1024     # batch-tile cap: HBM-roofline knee, tiny VMEM footprint
SPLIT_MIN = 256   # from this batch size on, force >=2 grid steps (v7x 2 TCs)


def _round_up(x, m):
    return (x + m - 1) // m * m


def _cdiv(a, b):
    return (a + b - 1) // b


def _choose_tm(batch):
    """Batch tile: minimize pad waste; keep >=2 parallel grid steps when big."""
    if batch < SPLIT_MIN:
        return _round_up(max(batch, 1), 8)        # single tile, sublane aligned
    n_steps = max(_cdiv(batch, TM_MAX), 2)        # >=2 steps => both v7x TCs fed
    return _round_up(_cdiv(batch, n_steps), 8)    # pad overshoot < 8 rows/step


def actor_kernel(state_ref,
                 w1_ref, b1_ref,
                 w2_ref, b2_ref,
                 wh_ref, bh_ref,
                 lo_ref, hi_ref,
                 out_ref):
    """One batch-tile of the Actor forward pass.

    Output columns [0, A) = mean, [A, 2A) = clamped log_std, [2A, 128) = pad.
    """
    x = state_ref[...].astype(jnp.bfloat16)

    # Linear(state_dim, 256) + ReLU  (bf16 MXU matmul, f32 accumulate / VPU)
    h1 = jnp.dot(x, w1_ref[...], preferred_element_type=jnp.float32) + b1_ref[...]
    h1 = jnp.maximum(h1, 0.0)

    # Linear(256, 256) + ReLU
    h2 = jnp.dot(h1.astype(jnp.bfloat16), w2_ref[...],
                 preferred_element_type=jnp.float32) + b2_ref[...]
    h2 = jnp.maximum(h2, 0.0)

    # Fused mean/log_std heads: one MXU pass, lane-padded (tm, 128) output.
    head = jnp.dot(h2.astype(jnp.bfloat16), wh_ref[...],
                   preferred_element_type=jnp.float32) + bh_ref[...]

    # Column-wise clamp via resident lo/hi rows: 2 VPU ops per tile instead of
    # iota + compares + where.  lo/hi are -inf/+inf outside the log_std
    # columns, so mean (and padding) pass through untouched.
    head = jnp.minimum(jnp.maximum(head, lo_ref[...]), hi_ref[...])

    out_ref[...] = head.astype(out_ref.dtype)


def prepare_actor_params(params, action_dim):
    """One-time packing: bf16 weights, fused + lane-padded head, clamp rows.

    Call this once outside the rollout loop so the cast/concat/pad is not
    redone per actor step.
    """
    head_pad = _round_up(2 * action_dim, 128)
    wh = jnp.concatenate([params["wm"], params["ws"]], axis=1)
    bh = jnp.concatenate([params["bm"], params["bs"]], axis=1)
    wh = jnp.pad(wh, ((0, 0), (0, head_pad - 2 * action_dim)))
    bh = jnp.pad(bh, ((0, 0), (0, head_pad - 2 * action_dim)))

    # Resident clamp rows: only cols [A, 2A) (log_std) get finite bounds.
    col = jnp.arange(head_pad)
    is_log_std = (col >= action_dim) & (col < 2 * action_dim)
    lo = jnp.where(is_log_std, LOG_STD_MIN, -jnp.inf).astype(jnp.float32)[None, :]
    hi = jnp.where(is_log_std, LOG_STD_MAX, jnp.inf).astype(jnp.float32)[None, :]

    return {
        "w1": params["w1"].astype(jnp.bfloat16),
        "b1": params["b1"].astype(jnp.float32),
        "w2": params["w2"].astype(jnp.bfloat16),
        "b2": params["b2"].astype(jnp.float32),
        "wh": wh.astype(jnp.bfloat16),
        "bh": bh.astype(jnp.float32),
        "lo": lo,
        "hi": hi,
    }


@functools.partial(jax.jit, static_argnums=(2,))
def actor_forward(state, prepared, action_dim):
    """Actor forward: returns (mean, log_std), each (B, action_dim) float32."""
    B, state_dim = state.shape
    H = prepared["w2"].shape[0]
    head_pad = prepared["wh"].shape[1]

    tm = _choose_tm(B)
    b_pad = _round_up(B, tm)
    if b_pad != B:
        state = jnp.pad(state, ((0, b_pad - B), (0, 0)))
    grid = (b_pad // tm,)

    flops = 2 * b_pad * (state_dim * H + H * H + H * head_pad)
    bytes_accessed = (
        b_pad * state_dim * 4
        + (prepared["w1"].size + prepared["w2"].size + prepared["wh"].size) * 2
        + (prepared["b1"].size + prepared["b2"].size + prepared["bh"].size
           + prepared["lo"].size + prepared["hi"].size) * 4
        + b_pad * head_pad * 4)

    const = lambda i: (0, 0)   # VMEM-resident across batch tiles

    out = pl.pallas_call(
        actor_kernel,
        out_shape=jax.ShapeDtypeStruct((b_pad, head_pad), jnp.float32),
        grid=grid,
        in_specs=[
            pl.BlockSpec((tm, state_dim), lambda i: (i, 0)),   # state tile
            pl.BlockSpec((state_dim, H), const),               # w1
            pl.BlockSpec((1, H), const),                       # b1
            pl.BlockSpec((H, H), const),                       # w2
            pl.BlockSpec((1, H), const),                       # b2
            pl.BlockSpec((H, head_pad), const),                # fused head W
            pl.BlockSpec((1, head_pad), const),                # fused head b
            pl.BlockSpec((1, head_pad), const),                # clamp lo row
            pl.BlockSpec((1, head_pad), const),                # clamp hi row
        ],
        out_specs=pl.BlockSpec((tm, head_pad), lambda i: (i, 0)),
        compiler_params=pltpu.CompilerParams(
            dimension_semantics=("parallel",)),
        cost_estimate=pl.CostEstimate(
            flops=flops, transcendentals=0, bytes_accessed=bytes_accessed),
    )(state,
      prepared["w1"], prepared["b1"],
      prepared["w2"], prepared["b2"],
      prepared["wh"], prepared["bh"],
      prepared["lo"], prepared["hi"])

    mean = out[:B, :action_dim]
    log_std = out[:B, action_dim:2 * action_dim]
    return mean, log_std


def init_actor_params(key, state_dim, action_dim, hidden=HIDDEN):
    """Deterministic synthetic init. Weights stored as (in, out), f32."""
    ks = jax.random.split(key, 8)

    def init_linear(kw, kb, fan_in, fan_out):
        bound = 1.0 / jnp.sqrt(fan_in)
        w = jax.random.uniform(kw, (fan_in, fan_out), jnp.float32, -bound, bound)
        b = jax.random.uniform(kb, (1, fan_out), jnp.float32, -bound, bound)
        return w, b

    w1, b1 = init_linear(ks[0], ks[1], state_dim, hidden)
    w2, b2 = init_linear(ks[2], ks[3], hidden, hidden)
    wm, bm = init_linear(ks[4], ks[5], hidden, action_dim)
    ws, bs = init_linear(ks[6], ks[7], hidden, action_dim)
    return {"w1": w1, "b1": b1, "w2": w2, "b2": b2,
            "wm": wm, "bm": bm, "ws": ws, "bs": bs}


def actor_forward_ref(state, params):
    """Plain-JAX reference mirroring the kernel's bf16-input / f32-accum math."""
    def mm(x, w):
        return lax.dot(x.astype(jnp.bfloat16).astype(jnp.float32),
                       w.astype(jnp.bfloat16).astype(jnp.float32),
                       precision=lax.Precision.HIGHEST)

    h1 = jnp.maximum(mm(state, params["w1"]) + params["b1"], 0.0)
    h2 = jnp.maximum(mm(h1, params["w2"]) + params["b2"], 0.0)
    mean = mm(h2, params["wm"]) + params["bm"]
    log_std = jnp.clip(mm(h2, params["ws"]) + params["bs"],
                       LOG_STD_MIN, LOG_STD_MAX)
    return mean, log_std


if __name__ == "__main__":
    key = jax.random.PRNGKey(0)
    k_state, k_params, k_state2 = jax.random.split(key, 3)

    B, state_dim, action_dim = 8, 32, 8
    state = jax.random.normal(k_state, (B, state_dim), jnp.float32)
    params = init_actor_params(k_params, state_dim, action_dim)
    prepared = prepare_actor_params(params, action_dim)

    # Small (rollout-style) batch.
    mean, log_std = actor_forward(state, prepared, action_dim)
    jax.block_until_ready((mean, log_std))

    mean_ref, log_std_ref = actor_forward_ref(state, params)
    assert mean.shape == (B, action_dim) and log_std.shape == (B, action_dim)
    assert jnp.allclose(mean, mean_ref, atol=1e-3, rtol=1e-3)
    assert jnp.allclose(log_std, log_std_ref, atol=1e-3, rtol=1e-3)
    assert jnp.all(log_std >= LOG_STD_MIN) and jnp.all(log_std <= LOG_STD_MAX)

    # Larger batch: exercises the multi-step (v7x-parallel) grid and the
    # pad-then-slice path (B=300 -> tm=152, grid=(2,)).
    B2 = 300
    state2 = jax.random.normal(k_state2, (B2, state_dim), jnp.float32)
    mean2, log_std2 = actor_forward(state2, prepared, action_dim)
    jax.block_until_ready((mean2, log_std2))

    mean2_ref, log_std2_ref = actor_forward_ref(state2, params)
    assert mean2.shape == (B2, action_dim) and log_std2.shape == (B2, action_dim)
    assert jnp.allclose(mean2, mean2_ref, atol=1e-3, rtol=1e-3)
    assert jnp.allclose(log_std2, log_std2_ref, atol=1e-3, rtol=1e-3)
    assert jnp.all(log_std2 >= LOG_STD_MIN) and jnp.all(log_std2 <= LOG_STD_MAX)

    print("KERNEL_OK")
</pallas_src>

<mosaic_0001>
module attributes {stable_mosaic.version = 11 : i64} {
  func.func @actor_kernel(%arg0: i32, %arg1: memref<8x32xf32, #tpu.memory_space<vmem>>, %arg2: memref<32x256xbf16, #tpu.memory_space<vmem>>, %arg3: memref<1x256xf32, #tpu.memory_space<vmem>>, %arg4: memref<256x256xbf16, #tpu.memory_space<vmem>>, %arg5: memref<1x256xf32, #tpu.memory_space<vmem>>, %arg6: memref<256x128xbf16, #tpu.memory_space<vmem>>, %arg7: memref<1x128xf32, #tpu.memory_space<vmem>>, %arg8: memref<1x128xf32, #tpu.memory_space<vmem>>, %arg9: memref<1x128xf32, #tpu.memory_space<vmem>>, %arg10: memref<8x128xf32, #tpu.memory_space<vmem>>) attributes {dimension_semantics = [#tpu.dimension_semantics<parallel>], iteration_bounds = array<i64: 1>, scalar_prefetch = 0 : i64, scratch_operands = 0 : i64, tpu.core_type = #tpu.core_type<tc>, window_params = [{transform_indices = @transform_0, window_bounds = array<i64: 8, 32>}, {pipeline_mode = #tpu.pipeline_mode<synchronous>, transform_indices = @transform_1, window_bounds = array<i64: 32, 256>}, {pipeline_mode = #tpu.pipeline_mode<synchronous>, transform_indices = @transform_2, window_bounds = array<i64: 1, 256>}, {pipeline_mode = #tpu.pipeline_mode<synchronous>, transform_indices = @transform_3, window_bounds = array<i64: 256, 256>}, {pipeline_mode = #tpu.pipeline_mode<synchronous>, transform_indices = @transform_4, window_bounds = array<i64: 1, 256>}, {pipeline_mode = #tpu.pipeline_mode<synchronous>, transform_indices = @transform_5, window_bounds = array<i64: 256, 128>}, {pipeline_mode = #tpu.pipeline_mode<synchronous>, transform_indices = @transform_6, window_bounds = array<i64: 1, 128>}, {pipeline_mode = #tpu.pipeline_mode<synchronous>, transform_indices = @transform_7, window_bounds = array<i64: 1, 128>}, {pipeline_mode = #tpu.pipeline_mode<synchronous>, transform_indices = @transform_8, window_bounds = array<i64: 1, 128>}, {transform_indices = @transform_9, window_bounds = array<i64: 8, 128>}]} {
    %c0 = arith.constant 0 : index
    %c0_0 = arith.constant 0 : index
    %0 = vector.load %arg1[%c0, %c0_0] : memref<8x32xf32, #tpu.memory_space<vmem>>, vector<8x32xf32>
    %1 = arith.truncf %0 : vector<8x32xf32> to vector<8x32xbf16>
    %c0_1 = arith.constant 0 : index
    %c0_2 = arith.constant 0 : index
    %2 = vector.load %arg2[%c0_1, %c0_2] : memref<32x256xbf16, #tpu.memory_space<vmem>>, vector<32x256xbf16>
    %cst = arith.constant dense<0.000000e+00> : vector<8x256xf32>
    %3 = tpu.matmul %1, %2, %cst {dimension_numbers = #tpu.dot_dimension_numbers<[1], [0], [0], [1], [0, 0, 1, 1], [], []>} : vector<8x32xbf16>, vector<32x256xbf16>, vector<8x256xf32> -> vector<8x256xf32>
    %c0_3 = arith.constant 0 : index
    %c0_4 = arith.constant 0 : index
    %4 = vector.load %arg3[%c0_3, %c0_4] : memref<1x256xf32, #tpu.memory_space<vmem>>, vector<1x256xf32>
    %5 = vector.broadcast %4 : vector<1x256xf32> to vector<8x256xf32>
    %6 = arith.addf %3, %5 : vector<8x256xf32>
    %cst_5 = arith.constant 0.000000e+00 : f32
    %7 = vector.broadcast %cst_5 : f32 to vector<8x256xf32>
    %8 = arith.maximumf %6, %7 : vector<8x256xf32>
    %9 = arith.truncf %8 : vector<8x256xf32> to vector<8x256xbf16>
    %c0_6 = arith.constant 0 : index
    %c0_7 = arith.constant 0 : index
    %10 = vector.load %arg4[%c0_6, %c0_7] : memref<256x256xbf16, #tpu.memory_space<vmem>>, vector<256x256xbf16>
    %cst_8 = arith.constant dense<0.000000e+00> : vector<8x256xf32>
    %11 = tpu.matmul %9, %10, %cst_8 {dimension_numbers = #tpu.dot_dimension_numbers<[1], [0], [0], [1], [0, 0, 1, 1], [], []>} : vector<8x256xbf16>, vector<256x256xbf16>, vector<8x256xf32> -> vector<8x256xf32>
    %c0_9 = arith.constant 0 : index
    %c0_10 = arith.constant 0 : index
    %12 = vector.load %arg5[%c0_9, %c0_10] : memref<1x256xf32, #tpu.memory_space<vmem>>, vector<1x256xf32>
    %13 = vector.broadcast %12 : vector<1x256xf32> to vector<8x256xf32>
    %14 = arith.addf %11, %13 : vector<8x256xf32>
    %cst_11 = arith.constant 0.000000e+00 : f32
    %15 = vector.broadcast %cst_11 : f32 to vector<8x256xf32>
    %16 = arith.maximumf %14, %15 : vector<8x256xf32>
    %17 = arith.truncf %16 : vector<8x256xf32> to vector<8x256xbf16>
    %c0_12 = arith.constant 0 : index
    %c0_13 = arith.constant 0 : index
    %18 = vector.load %arg6[%c0_12, %c0_13] : memref<256x128xbf16, #tpu.memory_space<vmem>>, vector<256x128xbf16>
    %cst_14 = arith.constant dense<0.000000e+00> : vector<8x128xf32>
    %19 = tpu.matmul %17, %18, %cst_14 {dimension_numbers = #tpu.dot_dimension_numbers<[1], [0], [0], [1], [0, 0, 1, 1], [], []>} : vector<8x256xbf16>, vector<256x128xbf16>, vector<8x128xf32> -> vector<8x128xf32>
    %c0_15 = arith.constant 0 : index
    %c0_16 = arith.constant 0 : index
    %20 = vector.load %arg7[%c0_15, %c0_16] : memref<1x128xf32, #tpu.memory_space<vmem>>, vector<1x128xf32>
    %21 = vector.broadcast %20 : vector<1x128xf32> to vector<8x128xf32>
    %22 = arith.addf %19, %21 : vector<8x128xf32>
    %c0_17 = arith.constant 0 : index
    %c0_18 = arith.constant 0 : index
    %23 = vector.load %arg8[%c0_17, %c0_18] : memref<1x128xf32, #tpu.memory_space<vmem>>, vector<1x128xf32>
    %24 = vector.broadcast %23 : vector<1x128xf32> to vector<8x128xf32>
    %25 = arith.maximumf %22, %24 : vector<8x128xf32>
    %c0_19 = arith.constant 0 : index
    %c0_20 = arith.constant 0 : index
    %26 = vector.load %arg9[%c0_19, %c0_20] : memref<1x128xf32, #tpu.memory_space<vmem>>, vector<1x128xf32>
    %27 = vector.broadcast %26 : vector<1x128xf32> to vector<8x128xf32>
    %28 = arith.minimumf %25, %27 : vector<8x128xf32>
    %c0_21 = arith.constant 0 : index
    %c0_22 = arith.constant 0 : index
    %29 = vector.load %arg10[%c0_21, %c0_22] : memref<8x128xf32, #tpu.memory_space<vmem>>, vector<8x128xf32>
    tpu.vector_store %arg10[%c0_21, %c0_22], %28 {strides = array<i32>} : memref<8x128xf32, #tpu.memory_space<vmem>>, vector<8x128xf32>,
    return
  }
  func.func @transform_0(%arg0: i32) -> (i32, i32) {
    %c0_i32 = arith.constant 0 : i32
    %c0_i32_0 = arith.constant 0 : i32
    return %arg0, %c0_i32 : i32, i32
  }
  func.func @transform_1(%arg0: i32) -> (i32, i32) {
    %c0_i32 = arith.constant 0 : i32
    %c0_i32_0 = arith.constant 0 : i32
    %c0_i32_1 = arith.constant 0 : i32
    return %c0_i32, %c0_i32_0 : i32, i32
  }
  func.func @transform_2(%arg0: i32) -> (i32, i32) {
    %c0_i32 = arith.constant 0 : i32
    %c0_i32_0 = arith.constant 0 : i32
    %c0_i32_1 = arith.constant 0 : i32
    return %c0_i32, %c0_i32_0 : i32, i32
  }
  func.func @transform_3(%arg0: i32) -> (i32, i32) {
    %c0_i32 = arith.constant 0 : i32
    %c0_i32_0 = arith.constant 0 : i32
    %c0_i32_1 = arith.constant 0 : i32
    return %c0_i32, %c0_i32_0 : i32, i32
  }
  func.func @transform_4(%arg0: i32) -> (i32, i32) {
    %c0_i32 = arith.constant 0 : i32
    %c0_i32_0 = arith.constant 0 : i32
    %c0_i32_1 = arith.constant 0 : i32
    return %c0_i32, %c0_i32_0 : i32, i32
  }
  func.func @transform_5(%arg0: i32) -> (i32, i32) {
    %c0_i32 = arith.constant 0 : i32
    %c0_i32_0 = arith.constant 0 : i32
    %c0_i32_1 = arith.constant 0 : i32
    return %c0_i32, %c0_i32_0 : i32, i32
  }
  func.func @transform_6(%arg0: i32) -> (i32, i32) {
    %c0_i32 = arith.constant 0 : i32
    %c0_i32_0 = arith.constant 0 : i32
    %c0_i32_1 = arith.constant 0 : i32
    return %c0_i32, %c0_i32_0 : i32, i32
  }
  func.func @transform_7(%arg0: i32) -> (i32, i32) {
    %c0_i32 = arith.constant 0 : i32
    %c0_i32_0 = arith.constant 0 : i32
    %c0_i32_1 = arith.constant 0 : i32
    return %c0_i32, %c0_i32_0 : i32, i32
  }
  func.func @transform_8(%arg0: i32) -> (i32, i32) {
    %c0_i32 = arith.constant 0 : i32
    %c0_i32_0 = arith.constant 0 : i32
    %c0_i32_1 = arith.constant 0 : i32
    return %c0_i32, %c0_i32_0 : i32, i32
  }
  func.func @transform_9(%arg0: i32) -> (i32, i32) {
    %c0_i32 = arith.constant 0 : i32
    %c0_i32_0 = arith.constant 0 : i32
    return %arg0, %c0_i32 : i32, i32
  }
}

</mosaic_0001>

<bundles_post_ra>
// kernel: actor_forward.1
= control target key start
LH: loop header
LB: loop body
LE: loop exit
PB: predicated region body
PF: predicated region fallthrough
CT: control target
= control target key end

     0   :  { %14 = vsyncpa [#allocation3], 0  ;;  %s1003_s0 = inlined_call_operand.hbm [shape: f32[8,32], index: 0, kind: input, shape index: {}]   ;;  %s1004_s1 = inlined_call_operand.hbm [shape: bf16[32,256], index: 1, kind: input, shape index: {}]   ;;  %s1005_s2 = inlined_call_operand.vmem [shape: f32[1,256], index: 2, kind: input, shape index: {}]   ;;  %s1006_s3 = inlined_call_operand.hbm [shape: bf16[256,256], index: 3, kind: input, shape index: {}]   ;;  %s1007_s4 = inlined_call_operand.vmem [shape: f32[1,256], index: 4, kind: input, shape index: {}]   ;;  %s1008_s5 = inlined_call_operand.hbm [shape: bf16[256,128], index: 5, kind: input, shape index: {}]   ;;  %s1009_s6 = inlined_call_operand.vmem [shape: f32[1,128], index: 6, kind: input, shape index: {}]   ;;  %s1010_s7 = inlined_call_operand.vmem [shape: f32[1,128], index: 7, kind: input, shape index: {}]   ;;  %s1011_s8 = inlined_call_operand.vmem [shape: f32[1,128], index: 8, kind: input, shape index: {}]   ;;  %s1012_s9 = inlined_call_operand.vmem [shape: f32[8,128], index: 9, kind: output, shape index: {}]  }
   0x1   :  { %15 = vsyncpa [#allocation5], 0 }
   0x2   :  { %16 = vsyncpa [#allocation8], 0  ;;  %s872_s30 = smov [#allocation4]   ;;  %s778_s13 = scalar_lea.hbm %s1004_s1, 512 }
   0x3   :  { %s32_s10 = sshll.u32 %s872_s30, 4  ;;  %p779_p0 = scmp.ne.s32.totalorder %s1004_s1, %s778_s13  ;;  %s33_s10 = int_to_ptr.vmem [resolvable:$true] %s32_s10 }
   0x4   :  { %p782_p1 = scmp.lt.u32.totalorder %s778_s13, %s1004_s1 }
   0x6   :  { %p784_p2 = pnand %p782_p1, %p779_p0 }
   0x8   :  { %787 = shalt.err (!%p784_p2)
}
   0x9   :  { %s788_s18 = scalar_lea.vmem %s33_s10, 512  ;;  %p793_p4 = scmp.lt.s32.totalorder %s33_s10, %s33_s10 }
   0xa   :  { %p789_p3 = scmp.ne.s32.totalorder %s33_s10, %s788_s18  ;;  %p794_p5 = scmp.lt.s32.totalorder %s788_s18, %s788_s18 }
   0xc   :  { %p795_p6 = por %p794_p5, %p793_p4 }
   0xe   :  { %p796_p7 = pnand %p795_p6, %p789_p3 }
  0x10   :  { %799 = shalt.err (!%p796_p7)
}
  0x11   :  { %s873_s19 = smov 128   ;;  %s874_s20 = smov 8  }
  0x12   :  { %38 = dma.hbm_to_vmem [thread:$0]  %s1004_s1, 512, %s33_s10, [#allocation5], %s873_s19, %s873_s19, %s874_s20  }
  0x13   :  { %s875_s23 = smov [#allocation2]   ;;  %s876_s25 = smov [#allocation6]  }
  0x14   :  { %s23_s24 = sshll.u32 %s875_s23, 4  ;;  %s46_s26 = sshll.u32 %s876_s25, 4  ;;  %s24_s24 = int_to_ptr.vmem [resolvable:$true] %s23_s24  ;;  %s47_s26 = int_to_ptr.vmem [resolvable:$true] %s46_s26 }
  0x15   :  { %s800_s29 = scalar_lea.hbm %s1003_s0, 128 }
  0x16   :  { %p801_p8 = scmp.ne.s32.totalorder %s1003_s0, %s800_s29  ;;  %p804_p9 = scmp.lt.u32.totalorder %s800_s29, %s1003_s0 }
  0x18   :  { %p806_p10 = pnand %p804_p9, %p801_p8 }
  0x1a   :  { %809 = shalt.err (!%p806_p10)
}
  0x1b   :  { %s810_s1 = scalar_lea.vmem %s24_s24, 128  ;;  %p815_p12 = scmp.lt.s32.totalorder %s24_s24, %s24_s24 }
  0x1c   :  { %p811_p11 = scmp.ne.s32.totalorder %s24_s24, %s810_s1  ;;  %p816_p13 = scmp.lt.s32.totalorder %s810_s1, %s810_s1 }
  0x1e   :  { %p817_p0 = por %p816_p13, %p815_p12 }
  0x20   :  { %p818_p1 = pnand %p817_p0, %p811_p11 }
  0x22   :  { %821 = shalt.err (!%p818_p1)
}
  0x23   :  { %26 = dma.hbm_to_vmem [thread:$0]  %s1003_s0, 128, %s24_s24, [#allocation3]  }
  0x24   :  { %s822_s17 = scalar_lea.hbm %s1006_s3, 4096 }
  0x25   :  { %p823_p2 = scmp.ne.s32.totalorder %s1006_s3, %s822_s17  ;;  %p826_p3 = scmp.lt.u32.totalorder %s822_s17, %s1006_s3 }
  0x27   :  { %p828_p4 = pnand %p826_p3, %p823_p2 }
  0x29   :  { %831 = shalt.err (!%p828_p4)
}
  0x2a   :  { %s832_s25 = scalar_lea.vmem %s47_s26, 4096  ;;  %p837_p6 = scmp.lt.s32.totalorder %s47_s26, %s47_s26 }
  0x2b   :  { %p833_p5 = scmp.ne.s32.totalorder %s47_s26, %s832_s25  ;;  %p838_p7 = scmp.lt.s32.totalorder %s832_s25, %s832_s25 }
  0x2d   :  { %p839_p8 = por %p838_p7, %p837_p6 }
  0x2f   :  { %p840_p9 = pnand %p839_p8, %p833_p5 }
  0x31   :  { %843 = shalt.err (!%p840_p9)
}
  0x32   :  { %52 = dma.hbm_to_vmem [thread:$0]  %s1006_s3, 4096, %s47_s26, [#allocation5], %s873_s19, %s873_s19, %s874_s20  }
  0x33   :  { %s877_s27 = smov [#allocation7]   ;;  %s844_s11 = scalar_lea.hbm %s1008_s5, 2048 }
  0x34   :  { %s60_s28 = sshll.u32 %s877_s27, 4  ;;  %p845_p10 = scmp.ne.s32.totalorder %s1008_s5, %s844_s11  ;;  %s61_s28 = int_to_ptr.vmem [resolvable:$true] %s60_s28 }
  0x35   :  { %p848_p11 = scmp.lt.u32.totalorder %s844_s11, %s1008_s5 }
  0x37   :  { %p850_p12 = pnand %p848_p11, %p845_p10 }
  0x39   :  { %853 = shalt.err (!%p850_p12)
}
  0x3a   :  { %s854_s14 = scalar_lea.vmem %s61_s28, 2048  ;;  %p859_p0 = scmp.lt.s32.totalorder %s61_s28, %s61_s28 }
  0x3b   :  { %p855_p13 = scmp.ne.s32.totalorder %s61_s28, %s854_s14  ;;  %p860_p1 = scmp.lt.s32.totalorder %s854_s14, %s854_s14 }
  0x3d   :  { %p861_p2 = por %p860_p1, %p859_p0 }
  0x3f   :  { %p862_p3 = pnand %p861_p2, %p855_p13 }
  0x41   :  { %865 = shalt.err (!%p862_p3)
}
  0x42   :  { %s878_s3 = smov 64   ;;  %s879_s19 = smov 4  }
  0x43   :  { %66 = dma.hbm_to_vmem [thread:$0]  %s1008_s5, 2048, %s61_s28, [#allocation8], %s878_s3, %s878_s3, %s879_s19  }
  0x44   :  { %866 = dma.done.wait [#allocation3], 128  }
  0x45   :  { %867 = vsyncadd [#allocation3], 4294967168 }
  0x46   :  { %868 = dma.done.wait [#allocation5], 4608  }
  0x47   :  { %869 = vsyncadd [#allocation5], 4294962688 }
  0x48   :  { %870 = dma.done.wait [#allocation8], 2048  }
  0x49   :  { %871 = vsyncadd [#allocation8], 4294965248  ;;  %v880_v0 = vmov 0   ;;  %v708_v1 = vld [vmem:[#allocation4 + $0x4] ss:$8 sps:$4 sm:$0xff]   ;;  %v86_v5 = vld [vmem:[#allocation2] sm:$0xff]  ;;  %v94_v51 = vlaneseq }
  0x4a   :  { %160 = vmatprep.mubr.bf16.mxu0 %v880_v0  ;;  %v710_v2 = vld [vmem:[#allocation4] ss:$8 sps:$4 sm:$0xff]   ;;  %128 = vmatprep.subr.bf16.mxu0 %v708_v1  ;;  %v711_v3 = vld [vmem:[#allocation4 + $0x14] ss:$8 sps:$4 sm:$0xff]   ;;  %v713_v4 = vld [vmem:[#allocation4 + $0x10] ss:$8 sps:$4 sm:$0xff]   ;;  %v87_v9 = vpack.c.bf16 %v86_v5, %v86_v5 }
  0x4b   :  { %129 = vmatpush1.bf16.msra.mxu0 %v710_v2  ;;  %v714_v6 = vld [vmem:[#allocation6 + $0x4] ss:$8 sps:$4 sm:$0xff]   ;;  %v716_v7 = vld [vmem:[#allocation6] ss:$8 sps:$4 sm:$0xff]   ;;  %v717_v8 = vld [vmem:[#allocation6 + $0x14] ss:$8 sps:$4 sm:$0xff]  }
  0x4c   :  { %130 = vmatprep.subr.bf16.mxu0 %v711_v3  ;;  %377 = vmatprep.subr.bf16.mxu1 %v714_v6  ;;  %v719_v10 = vld [vmem:[#allocation6 + $0x10] ss:$8 sps:$4 sm:$0xff]   ;;  %vm124_vm0 = vcmask 261120   ;;  %v720_v11 = vld [vmem:[#allocation6 + $0x24] ss:$8 sps:$4 sm:$0xff]   ;;  %v95_v52 = vshrl.u32 %v94_v51, 7 }
  0x4d   :  { %378 = vmatpush1.bf16.msra.mxu1 %v716_v7  ;;  %v722_v12 = vld [vmem:[#allocation6 + $0x20] ss:$8 sps:$4 sm:$0xff]   ;;  %v723_v13 = vld [vmem:[#allocation6 + $0x34] ss:$8 sps:$4 sm:$0xff]   ;;  %v725_v14 = vld [vmem:[#allocation6 + $0x30] ss:$8 sps:$4 sm:$0xff]  }
  0x4e   :  { %379 = vmatprep.subr.bf16.mxu1 %v717_v8  ;;  %v726_v15 = vld [vmem:[#allocation6 + $0x44] ss:$8 sps:$4 sm:$0xff]   ;;  %v728_v16 = vld [vmem:[#allocation6 + $0x40] ss:$8 sps:$4 sm:$0xff]   ;;  %v729_v17 = vld [vmem:[#allocation6 + $0x54] ss:$8 sps:$4 sm:$0xff]  }
  0x4f   :  { %131 = vmatpush1.bf16.msra.mxu0 %v713_v4  ;;  %v731_v18 = vld [vmem:[#allocation6 + $0x50] ss:$8 sps:$4 sm:$0xff]   ;;  %v732_v19 = vld [vmem:[#allocation6 + $0x64] ss:$8 sps:$4 sm:$0xff]   ;;  %v734_v20 = vld [vmem:[#allocation6 + $0x60] ss:$8 sps:$4 sm:$0xff]  }
  0x50   :  { %v735_v21 = vld [vmem:[#allocation6 + $0x74] ss:$8 sps:$4 sm:$0xff]   ;;  %v737_v22 = vld [vmem:[#allocation6 + $0x70] ss:$8 sps:$4 sm:$0xff]   ;;  %v738_v23 = vld [vmem:[#allocation6 + $0x84] ss:$8 sps:$4 sm:$0xff]  }
  0x51   :  { %380 = vmatpush1.bf16.msra.mxu1 %v719_v10  ;;  %v740_v24 = vld [vmem:[#allocation6 + $0x80] ss:$8 sps:$4 sm:$0xff]   ;;  %v741_v25 = vld [vmem:[#allocation6 + $0x94] ss:$8 sps:$4 sm:$0xff]   ;;  %v743_v26 = vld [vmem:[#allocation6 + $0x90] ss:$8 sps:$4 sm:$0xff]  }
  0x52   :  { %625 = vmatmul.mubr.msk.bf16.vlgmr.msra.gmra.mrb[0].mxu0 %vm124_vm0, %v87_v9  ;;  %381 = vmatprep.subr.bf16.mxu1 %v720_v11  ;;  %v744_v27 = vld [vmem:[#allocation6 + $0xa4] ss:$8 sps:$4 sm:$0xff]   ;;  %v746_v28 = vld [vmem:[#allocation6 + $0xa0] ss:$8 sps:$4 sm:$0xff]   ;;  %v747_v29 = vld [vmem:[#allocation6 + $0xb4] ss:$8 sps:$4 sm:$0xff]  }
  0x53   :  { %v749_v30 = vld [vmem:[#allocation6 + $0xb0] ss:$8 sps:$4 sm:$0xff]   ;;  %v750_v31 = vld [vmem:[#allocation6 + $0xc4] ss:$8 sps:$4 sm:$0xff]   ;;  %v752_v32 = vld [vmem:[#allocation6 + $0xc0] ss:$8 sps:$4 sm:$0xff]  }
  0x54   :  { %v753_v33 = vld [vmem:[#allocation6 + $0xd4] ss:$8 sps:$4 sm:$0xff]   ;;  %v755_v34 = vld [vmem:[#allocation6 + $0xd0] ss:$8 sps:$4 sm:$0xff]   ;;  %v756_v35 = vld [vmem:[#allocation6 + $0xe4] ss:$8 sps:$4 sm:$0xff]  }
  0x55   :  { %382 = vmatpush1.bf16.msra.mxu1 %v722_v12  ;;  %v758_v36 = vld [vmem:[#allocation6 + $0xe0] ss:$8 sps:$4 sm:$0xff]   ;;  %v759_v37 = vld [vmem:[#allocation6 + $0xf4] ss:$8 sps:$4 sm:$0xff]   ;;  %v761_v38 = vld [vmem:[#allocation6 + $0xf0] ss:$8 sps:$4 sm:$0xff]  }
  0x56   :  { %383 = vmatprep.subr.bf16.mxu1 %v723_v13  ;;  %v762_v39 = vld [vmem:[#allocation7 + $0x40] sm:$0xff]   ;;  %v764_v41 = vld [vmem:[#allocation7 + $0x48] sm:$0xff]   ;;  %v766_v43 = vld [vmem:[#allocation7 + $0x50] sm:$0xff]   ;;  %v96_v53 = vsub.s32 0, %v95_v52  ;;  %v100_v55 = vsub.s32 1, %v95_v52 }
  0x57   :  { %v763_v40 = vld [vmem:[#allocation7] sm:$0xff]   ;;  %677 = vmatprep.subr.bf16.mxu0 %v762_v39  ;;  %v765_v42 = vld [vmem:[#allocation7 + $0x8] sm:$0xff]   ;;  %v767_v44 = vld [vmem:[#allocation7 + $0x10] sm:$0xff]  }
  0x58   :  { %678 = vmatpush3.bf16.msra.mxu0 %v763_v40  ;;  %v768_v45 = vld [vmem:[#allocation7 + $0x58] sm:$0xff]   ;;  %v770_v47 = vld [vmem:[#allocation7 + $0x60] sm:$0xff]   ;;  %v772_v49 = vld [vmem:[#allocation7 + $0x68] sm:$0xff]  }
  0x59   :  { %384 = vmatpush1.bf16.msra.mxu1 %v725_v14  ;;  %679 = vmatprep.subr.bf16.mxu0 %v764_v41  ;;  %v769_v46 = vld [vmem:[#allocation7 + $0x18] sm:$0xff]   ;;  %v771_v48 = vld [vmem:[#allocation7 + $0x20] sm:$0xff]   ;;  %v773_v50 = vld [vmem:[#allocation7 + $0x28] sm:$0xff]  }
  0x5a   :  { %385 = vmatprep.subr.bf16.mxu1 %v726_v15  ;;  %v92_v54 = vld [vmem:[%s1005_s2] sm:$0x3]  ;;  %v774_v4 = vld [vmem:[#allocation7 + $0x70] sm:$0xff]  }
  0x5b   :  { %v97_v56 = vrot.slane %v92_v54, %v96_v53  ;;  %v101_v57 = vrot.slane %v92_v54, %v100_v55  ;;  %v775_v5 = vld [vmem:[#allocation7 + $0x30] sm:$0xff]   ;;  %v776_v6 = vld [vmem:[#allocation7 + $0x78] sm:$0xff]  }
  0x5c   :  { %680 = vmatpush3.bf16.msra.mxu0 %v765_v42  ;;  %v777_v7 = vld [vmem:[#allocation7 + $0x38] sm:$0xff]  }
  0x5d   :  { %386 = vmatpush1.bf16.msra.mxu1 %v728_v16  ;;  %681 = vmatprep.subr.bf16.mxu0 %v766_v43  ;;  %v205_v8 = vld [vmem:[%s1007_s4] sm:$0x3] }
  0x5e   :  { %387 = vmatprep.subr.bf16.mxu1 %v729_v17  ;;  %v210_v9 = vrot.slane %v205_v8, %v96_v53  ;;  %v214_v10 = vrot.slane %v205_v8, %v100_v55 }
  0x60   :  { %682 = vmatpush3.bf16.msra.mxu0 %v767_v44 }
  0x61   :  { %388 = vmatpush1.bf16.msra.mxu1 %v731_v18  ;;  %683 = vmatprep.subr.bf16.mxu0 %v768_v45 }
  0x62   :  { %389 = vmatprep.subr.bf16.mxu1 %v732_v19 }
  0x64   :  { %684 = vmatpush3.bf16.msra.mxu0 %v769_v46 }
  0x65   :  { %390 = vmatpush1.bf16.msra.mxu1 %v734_v20  ;;  %685 = vmatprep.subr.bf16.mxu0 %v770_v47 }
  0x66   :  { %391 = vmatprep.subr.bf16.mxu1 %v735_v21 }
  0x68   :  { %686 = vmatpush3.bf16.msra.mxu0 %v771_v48 }
  0x69   :  { %392 = vmatpush1.bf16.msra.mxu1 %v737_v22  ;;  %687 = vmatprep.subr.bf16.mxu0 %v772_v49  ;;  %v658_v22 = vld [vmem:[%s1009_s6] ss:$0 sm:$0xff] }
  0x6a   :  { %393 = vmatprep.subr.bf16.mxu1 %v738_v23 }
  0x6c   :  { %688 = vmatpush3.bf16.msra.mxu0 %v773_v50 }
  0x6d   :  { %394 = vmatpush1.bf16.msra.mxu1 %v740_v24  ;;  %689 = vmatprep.subr.bf16.mxu0 %v774_v4 }
  0x6e   :  { %395 = vmatprep.subr.bf16.mxu1 %v741_v25 }
  0x70   :  { %690 = vmatpush3.bf16.msra.mxu0 %v775_v5 }
  0x71   :  { %396 = vmatpush1.bf16.msra.mxu1 %v743_v26  ;;  %691 = vmatprep.subr.bf16.mxu0 %v776_v6  ;;  %v675_v26 = vld [vmem:[%s1010_s7] ss:$0 sm:$0xff] }
  0x72   :  { %397 = vmatprep.subr.bf16.mxu1 %v744_v27 }
  0x74   :  { %692 = vmatpush3.bf16.msra.mxu0 %v777_v7 }
  0x75   :  { %398 = vmatpush1.bf16.msra.mxu1 %v746_v28 }
  0x76   :  { %399 = vmatprep.subr.bf16.mxu1 %v747_v29  ;;  %v676_v29 = vld [vmem:[%s1011_s8] ss:$0 sm:$0xff] }
  0x79   :  { %400 = vmatpush1.bf16.msra.mxu1 %v749_v30 }
  0x7a   :  { %401 = vmatprep.subr.bf16.mxu1 %v750_v31 }
  0x7d   :  { %402 = vmatpush1.bf16.msra.mxu1 %v752_v32 }
  0x7e   :  { %403 = vmatprep.subr.bf16.mxu1 %v753_v33 }
  0x81   :  { %404 = vmatpush1.bf16.msra.mxu1 %v755_v34 }
  0x82   :  { %405 = vmatprep.subr.bf16.mxu1 %v756_v35 }
  0x85   :  { %406 = vmatpush1.bf16.msra.mxu1 %v758_v36 }
  0x86   :  { %407 = vmatprep.subr.bf16.mxu1 %v759_v37 }
  0x89   :  { %408 = vmatpush1.bf16.msra.mxu1 %v761_v38 }
 0x125   :  { %v162_v58 = vpop.f32.mrb[0].mxu0 }
 0x126   :  { %v163_v59 = vadd.f32 %v162_v58, %v97_v56  ;;  %v164_v60 = vpop.f32.mrb[1].mxu0 }
 0x127   :  { %v165_v61 = vadd.f32 %v164_v60, %v101_v57  ;;  %v166_v62 = vpop.f32.mrb[2].mxu0 }
 0x128   :  { %v169_v63 = vmax.f32 %v163_v59, 0.0  ;;  %v167_v0 = vpop.f32.mrb[3].mxu0 }
 0x129   :  { %v170_v1 = vmax.f32 %v165_v61, 0.0 }
 0x12a   :  { %v171_v3 = vpack.c.bf16 %v169_v63, %v169_v63 }
 0x12b   :  { %v172_v2 = vpack.c.bf16 %v170_v1, %v170_v1 }
 0x12d   :  { %409 = vmatprep.mubr.bf16.mxu1 %v172_v2 }
 0x12e   :  { %410 = vmatmul.mubr.bf16.vlgmr.msra.gmra.mrb[0].mxu1 %v171_v3 }
 0x201   :  { %v411_v11 = vpop.f32.mrb[0].mxu1 }
 0x202   :  { %v412_v12 = vadd.f32 %v411_v11, %v210_v9  ;;  %v413_v13 = vpop.f32.mrb[1].mxu1 }
 0x203   :  { %v414_v14 = vadd.f32 %v413_v13, %v214_v10  ;;  %v415_v15 = vpop.f32.mrb[2].mxu1 }
 0x204   :  { %v418_v16 = vmax.f32 %v412_v12, 0.0  ;;  %v416_v17 = vpop.f32.mrb[3].mxu1 }
 0x205   :  { %v419_v18 = vmax.f32 %v414_v14, 0.0 }
 0x206   :  { %v420_v20 = vpack.c.bf16 %v418_v16, %v418_v16 }
 0x207   :  { %v421_v19 = vpack.c.bf16 %v419_v18, %v419_v18 }
 0x209   :  { %589 = vmatprep.mubr.bf16.mxu0 %v421_v19 }
 0x20a   :  { %590 = vmatmul.mubr.bf16.vlgmr.msra.gmra.mrb[4].mxu0 %v420_v20 }
 0x2dd   :  { %v693_v21 = vpop.f32.mrb[4].mxu0 }
 0x2de   :  { %v694_v23 = vpop.f32.mrb[5].mxu0 }
 0x2df   :  { %v695_v24 = vadd.f32 %v694_v23, %v693_v21  ;;  %v696_v25 = vpop.f32.mrb[6].mxu0 }
 0x2e0   :  { %v697_v27 = vpop.f32.mrb[7].mxu0 }
 0x2e1   :  { %v592_v28 = vadd.f32 %v695_v24, %v658_v22 }
 0x2e3   :  { %v604_v30 = vmax.f32 %v592_v28, %v675_v26 }
 0x2e5   :  { %v612_v31 = vmin.f32 %v604_v30, %v676_v29 }
 0x2e7   :  { %613 = vst [vmem:[%s1012_s9] sm:$0xff] %v612_v31 }
 0x2e8   :  { %618 = vsyncpa [#allocation3], 1 }
 0x2e9   :  { %619 = vsyncpa [#allocation5], 1 }
 0x2ea   :  { %620 = vsyncpa [#allocation8], 1 }

</bundles_post_ra>
